<compile_context>
chip_gen: v6e
topology: v6e:2x2x1
jax: 0.10.0
libtpu: 0.0.40
codegen_flags: <defaults>
</compile_context>

<pallas_src>
import jax
import jax.numpy as jnp
import numpy as np
from jax import lax
from jax.experimental import pallas as pl
from jax.experimental.pallas import tpu as pltpu


def _round_up(x, m):
    return (x + m - 1) // m * m


# ---------------------------------------------------------------------------
# Pass 1: projection + node -> hyperedge aggregation.
#   xp_tile  = X_tile @ W
#   Xe      += H_tile^T @ xp_tile   (resident VMEM accumulator over N tiles)
# ---------------------------------------------------------------------------
def _pass1_kernel(x_ref, w_ref, h_ref, xp_ref, xe_ref):
    i = pl.program_id(0)

    xp = jnp.dot(x_ref[...], w_ref[...], preferred_element_type=jnp.float32)
    xp_ref[...] = xp

    @pl.when(i == 0)
    def _():
        xe_ref[...] = jnp.zeros_like(xe_ref)

    # Contract over the node (row) axis of both operands: Xe += H_tile^T @ Xp_tile,
    # without materializing a transpose. H is exact 0/1, bf16 -> f32 is lossless.
    h = h_ref[...].astype(jnp.float32)
    xe_ref[...] += lax.dot_general(
        h, xp,
        dimension_numbers=(((0,), (0,)), ((), ())),
        preferred_element_type=jnp.float32)


# ---------------------------------------------------------------------------
# Pass 2: hyperedge -> node aggregation + GIN epilogue.
#   out_tile = (1 + eps) * Xp_tile + H_tile @ Xe
# ---------------------------------------------------------------------------
def _pass2_kernel(eps_ref, h_ref, xe_ref, xp_ref, out_ref):
    scale = 1.0 + eps_ref[0]                       # single SMEM scalar read
    h = h_ref[...].astype(jnp.float32)
    xv = jnp.dot(h, xe_ref[...], preferred_element_type=jnp.float32)
    out_ref[...] = xv + scale * xp_ref[...]        # fused FMA epilogue


def dgl_hypergin_conv(X, W_t, H, eps, *, tile_n=128):
    """DGLHyperGINConv forward.

    X:   [N, C_in]  float32 node features.
    W_t: [C_in, F]  float32 (transposed nn.Linear weight, F = heads*out).
    H:   [N, E]     0/1 incidence matrix (any float dtype).
    eps: [1]        float32.
    Returns [N, F] float32.
    """
    N, C = X.shape
    F = W_t.shape[1]
    E = H.shape[1]

    tile_n = min(tile_n, _round_up(N, 8))
    n_pad = _round_up(N, tile_n)
    e_pad = _round_up(E, 128)
    n_tiles = n_pad // tile_n

    # Zero padding is exact: padded node rows / edge columns contribute nothing.
    X_p = jnp.zeros((n_pad, C), jnp.float32).at[:N].set(X.astype(jnp.float32))
    H_p = jnp.zeros((n_pad, e_pad), jnp.bfloat16).at[:N, :E].set(
        H.astype(jnp.bfloat16))

    # Rough per-call VMEM need (double-buffered tiles + resident blocks),
    # kept under a v7x-safe ceiling (64 MiB physical on v7x).
    def _limit(nbytes):
        return int(max(16 << 20, min(48 << 20, 3 * nbytes)))

    bytes1 = (2 * (tile_n * C * 4 + tile_n * e_pad * 2 + tile_n * F * 4)
              + 2 * C * F * 4 + 2 * e_pad * F * 4)
    bytes2 = (2 * (tile_n * e_pad * 2 + 2 * tile_n * F * 4)
              + 2 * e_pad * F * 4)

    # ---- pass 1: Xp and Xe --------------------------------------------------
    xp, xe = pl.pallas_call(
        _pass1_kernel,
        out_shape=(jax.ShapeDtypeStruct((n_pad, F), jnp.float32),
                   jax.ShapeDtypeStruct((e_pad, F), jnp.float32)),
        grid_spec=pltpu.PrefetchScalarGridSpec(
            num_scalar_prefetch=0,
            grid=(n_tiles,),
            in_specs=[
                pl.BlockSpec((tile_n, C), lambda i: (i, 0)),      # X row tile
                pl.BlockSpec((C, F), lambda i: (0, 0)),           # W (resident)
                pl.BlockSpec((tile_n, e_pad), lambda i: (i, 0)),  # H row tile (bf16)
            ],
            out_specs=[
                pl.BlockSpec((tile_n, F), lambda i: (i, 0)),      # Xp row tile
                pl.BlockSpec((e_pad, F), lambda i: (0, 0)),       # Xe accumulator
            ],
        ),
        compiler_params=pltpu.CompilerParams(
            dimension_semantics=("arbitrary",),    # N axis is a reduction for Xe
            vmem_limit_bytes=_limit(bytes1)),
        cost_estimate=pl.CostEstimate(
            flops=2 * n_pad * C * F + 2 * n_pad * e_pad * F,
            transcendentals=0,
            bytes_accessed=(n_pad * C * 4 + C * F * 4 + n_pad * e_pad * 2
                            + n_pad * F * 4 + e_pad * F * 4)),
    )(X_p, W_t.astype(jnp.float32), H_p)

    # ---- pass 2: Xv and the GIN combine --------------------------------------
    out = pl.pallas_call(
        _pass2_kernel,
        out_shape=jax.ShapeDtypeStruct((n_pad, F), jnp.float32),
        grid_spec=pltpu.PrefetchScalarGridSpec(
            num_scalar_prefetch=0,
            grid=(n_tiles,),
            in_specs=[
                pl.BlockSpec(memory_space=pltpu.MemorySpace.SMEM),  # eps scalar
                pl.BlockSpec((tile_n, e_pad), lambda i: (i, 0)),    # H row tile
                pl.BlockSpec((e_pad, F), lambda i: (0, 0)),         # Xe (resident)
                pl.BlockSpec((tile_n, F), lambda i: (i, 0)),        # Xp row tile
            ],
            out_specs=pl.BlockSpec((tile_n, F), lambda i: (i, 0)),  # lane-dense out
        ),
        compiler_params=pltpu.CompilerParams(
            dimension_semantics=("parallel",),     # independent row tiles
            vmem_limit_bytes=_limit(bytes2)),
        cost_estimate=pl.CostEstimate(
            flops=2 * n_pad * e_pad * F + 2 * n_pad * F,
            transcendentals=0,
            bytes_accessed=(n_pad * e_pad * 2 + e_pad * F * 4
                            + 2 * n_pad * F * 4 + 4)),
    )(eps.astype(jnp.float32), H_p, xe, xp)

    return out[:N]


if __name__ == "__main__":
    # Small synthetic hypergraph; deliberately not pre-aligned so the padding
    # path (N -> 256, E -> 128) is exercised.
    N = 200            # number of nodes
    E = 100            # number of hyperedges
    in_channels = 64
    heads = 8
    out_channels = 16
    F = heads * out_channels  # 128 -> lane-dense feature dim

    key = jax.random.PRNGKey(0)
    kx, kw, kg = jax.random.split(key, 3)

    # Node features.
    X = jax.random.normal(kx, (N, in_channels), dtype=jnp.float32)

    # nn.Linear(in_channels, heads*out_channels, bias=False): PyTorch stores the
    # weight as [F, C_in]; pre-transpose to [C_in, F] for the kernel.
    bound = 1.0 / np.sqrt(in_channels)
    W = jax.random.uniform(kw, (F, in_channels), dtype=jnp.float32,
                           minval=-bound, maxval=bound)
    W_t = W.T  # [C_in, F]

    # Deterministic random 0/1 incidence structure H[v, e] (~25% density).
    H = (jax.random.uniform(kg, (N, E)) < 0.25).astype(jnp.float32)

    # eps parameter, initialized to 0 as in the module's __init__.
    eps = jnp.zeros((1,), dtype=jnp.float32)

    out = dgl_hypergin_conv(X, W_t, H, eps)
    out = jax.block_until_ready(out)

    # Pure-JAX reference (same dense-incidence semantics as DGL copy_u_sum).
    Xp_ref = X @ W_t
    Xe_ref = H.T @ Xp_ref
    Xv_ref = H @ Xe_ref
    ref = (1.0 + eps[0]) * Xp_ref + Xv_ref

    assert out.shape == (N, F)
    np.testing.assert_allclose(np.asarray(out), np.asarray(ref),
                               rtol=1e-4, atol=1e-3)
    print("KERNEL_OK")
</pallas_src>

<mosaic_0001>
module attributes {stable_mosaic.version = 11 : i64} {
  func.func @_pass1_kernel(%arg0: i32, %arg1: memref<128x64xf32, #tpu.memory_space<vmem>>, %arg2: memref<64x128xf32, #tpu.memory_space<vmem>>, %arg3: memref<128x128xbf16, #tpu.memory_space<vmem>>, %arg4: memref<128x128xf32, #tpu.memory_space<vmem>>, %arg5: memref<128x128xf32, #tpu.memory_space<vmem>>) attributes {dimension_semantics = [#tpu.dimension_semantics<arbitrary>], iteration_bounds = array<i64: 2>, scalar_prefetch = 0 : i64, scratch_operands = 0 : i64, tpu.core_type = #tpu.core_type<tc>, window_params = [{transform_indices = @transform_0, window_bounds = array<i64: 128, 64>}, {pipeline_mode = #tpu.pipeline_mode<synchronous>, transform_indices = @transform_1, window_bounds = array<i64: 64, 128>}, {transform_indices = @transform_2, window_bounds = array<i64: 128, 128>}, {transform_indices = @transform_3, window_bounds = array<i64: 128, 128>}, {pipeline_mode = #tpu.pipeline_mode<synchronous>, transform_indices = @transform_4, window_bounds = array<i64: 128, 128>}]} {
    %c0 = arith.constant 0 : index
    %c0_0 = arith.constant 0 : index
    %0 = vector.load %arg1[%c0, %c0_0] : memref<128x64xf32, #tpu.memory_space<vmem>>, vector<128x64xf32>
    %c0_1 = arith.constant 0 : index
    %c0_2 = arith.constant 0 : index
    %1 = vector.load %arg2[%c0_1, %c0_2] : memref<64x128xf32, #tpu.memory_space<vmem>>, vector<64x128xf32>
    %cst = arith.constant dense<0.000000e+00> : vector<128x128xf32>
    %2 = tpu.matmul %0, %1, %cst {dimension_numbers = #tpu.dot_dimension_numbers<[1], [0], [0], [1], [0, 0, 1, 1], [], []>} : vector<128x64xf32>, vector<64x128xf32>, vector<128x128xf32> -> vector<128x128xf32>
    %c0_3 = arith.constant 0 : index
    %c0_4 = arith.constant 0 : index
    %3 = vector.load %arg4[%c0_3, %c0_4] : memref<128x128xf32, #tpu.memory_space<vmem>>, vector<128x128xf32>
    tpu.vector_store %arg4[%c0_3, %c0_4], %2 {strides = array<i32>} : memref<128x128xf32, #tpu.memory_space<vmem>>, vector<128x128xf32>,
    %c0_i32 = arith.constant 0 : i32
    %4 = arith.cmpi eq, %arg0, %c0_i32 : i32
    %5 = arith.extui %4 : i1 to i32
    %c0_i32_5 = arith.constant 0 : i32
    %6 = arith.cmpi ne, %5, %c0_i32_5 : i32
    scf.if %6 {
      %cst_13 = arith.constant 0.000000e+00 : f32
      %13 = vector.broadcast %cst_13 : f32 to vector<128x128xf32>
      %c0_14 = arith.constant 0 : index
      %c0_15 = arith.constant 0 : index
      %14 = vector.load %arg5[%c0_14, %c0_15] : memref<128x128xf32, #tpu.memory_space<vmem>>, vector<128x128xf32>
      tpu.vector_store %arg5[%c0_14, %c0_15], %13 {strides = array<i32>} : memref<128x128xf32, #tpu.memory_space<vmem>>, vector<128x128xf32>,
    } else {
    }
    %c0_6 = arith.constant 0 : index
    %c0_7 = arith.constant 0 : index
    %7 = vector.load %arg3[%c0_6, %c0_7] : memref<128x128xbf16, #tpu.memory_space<vmem>>, vector<128x128xbf16>
    %8 = arith.extf %7 : vector<128x128xbf16> to vector<128x128xf32>
    %c0_8 = arith.constant 0 : index
    %c0_9 = arith.constant 0 : index
    %9 = vector.load %arg5[%c0_8, %c0_9] : memref<128x128xf32, #tpu.memory_space<vmem>>, vector<128x128xf32>
    %cst_10 = arith.constant dense<0.000000e+00> : vector<128x128xf32>
    %10 = tpu.matmul %8, %2, %cst_10 {dimension_numbers = #tpu.dot_dimension_numbers<[0], [0], [1], [1], [0, 1, 1, 1], [], []>} : vector<128x128xf32>, vector<128x128xf32>, vector<128x128xf32> -> vector<128x128xf32>
    %11 = arith.addf %9, %10 : vector<128x128xf32>
    %c0_11 = arith.constant 0 : index
    %c0_12 = arith.constant 0 : index
    %12 = vector.load %arg5[%c0_11, %c0_12] : memref<128x128xf32, #tpu.memory_space<vmem>>, vector<128x128xf32>
    tpu.vector_store %arg5[%c0_11, %c0_12], %11 {strides = array<i32>} : memref<128x128xf32, #tpu.memory_space<vmem>>, vector<128x128xf32>,
    return
  }
  func.func @transform_0(%arg0: i32) -> (i32, i32) {
    %c0_i32 = arith.constant 0 : i32
    %c0_i32_0 = arith.constant 0 : i32
    return %arg0, %c0_i32 : i32, i32
  }
  func.func @transform_1(%arg0: i32) -> (i32, i32) {
    %c0_i32 = arith.constant 0 : i32
    %c0_i32_0 = arith.constant 0 : i32
    %c0_i32_1 = arith.constant 0 : i32
    return %c0_i32, %c0_i32_0 : i32, i32
  }
  func.func @transform_2(%arg0: i32) -> (i32, i32) {
    %c0_i32 = arith.constant 0 : i32
    %c0_i32_0 = arith.constant 0 : i32
    return %arg0, %c0_i32 : i32, i32
  }
  func.func @transform_3(%arg0: i32) -> (i32, i32) {
    %c0_i32 = arith.constant 0 : i32
    %c0_i32_0 = arith.constant 0 : i32
    return %arg0, %c0_i32 : i32, i32
  }
  func.func @transform_4(%arg0: i32) -> (i32, i32) {
    %c0_i32 = arith.constant 0 : i32
    %c0_i32_0 = arith.constant 0 : i32
    %c0_i32_1 = arith.constant 0 : i32
    return %c0_i32, %c0_i32_0 : i32, i32
  }
}

</mosaic_0001>

<bundles_post_ra>
// kernel: tpu_custom_call.1
= control target key start
LH: loop header
LB: loop body
LE: loop exit
PB: predicated region body
PF: predicated region fallthrough
CT: control target
= control target key end

     0   :  { %10 = vsyncpa [#allocation3], 0  ;;  %s1568_s0 = inlined_call_operand.vmem [shape: f32[256,64], index: 0, kind: input, shape index: {}]   ;;  %s1569_s1 = inlined_call_operand.vmem [shape: f32[64,128], index: 1, kind: input, shape index: {}]   ;;  %s1570_s2 = inlined_call_operand.vmem [shape: bf16[256,128], index: 2, kind: input, shape index: {}]   ;;  %s1571_s3 = inlined_call_operand.hbm [shape: f32[256,128], index: 3, kind: output, shape index: {0}]   ;;  %s1572_s4 = inlined_call_operand.hbm [shape: f32[128,128], index: 4, kind: output, shape index: {1}]  }
   0x1   :  { %12 = vsyncpa [#allocation3 + $0x1], 0 }
   0x2   :  { %13 = vsyncpa [#allocation5], 0  ;;  %s1269_s15 = smov 0   ;;  %s1271_s16 = smov 0  }
   0x3   :  { %s1273_s17 = smov 0   ;;  %s1275_s18 = smov 0  }
   0x4 LB: > { %s1290_s19 = sadd.s32 4294967295, %s1237_s18   ;;  %s843_s20 = sadd.s32 4294967294, %s1237_s18   ;;  %s1237_s18 = sphi %s1275_s18, %s1578_s18   ;;  %s1233_s17 = sphi %s1273_s17, %s1577_s17   ;;  %s1229_s16 = sphi %s1271_s16, %s1576_s16   ;;  %s1225_s15 = sphi %s1269_s15, %s1575_s15  }
   0x5   : > { %s1294_s21 = sadd.s32 1, %s1237_s18   ;;  %s99_s22 = sadd.s32 1, %s1233_s17 }
   0x6   : > { %s96_s23 = ssub.s32 %s1237_s18, %s1294_s21  ;;  %p109_p0 = scmp.ne.s32.totalorder %s1233_s17, %s1229_s16 }
   0x7   : > { %p97_p1 = scmp.eq.s32.totalorder %s96_s23, 0  ;;  %p110_p2 = scmp.eq.s32.totalorder %s1290_s19, 1 }
   0x8   : > { %p115_p3 = scmp.ne.s32.totalorder %s1229_s16, %s1225_s15  ;;  %p116_p4 = scmp.eq.s32.totalorder %s843_s20, 1 }
   0x9   : > { %s1305_s24 = scalar_select %p97_p1, %s1233_s17, %s99_s22  }
   0xa   : > { %p1309_p5 = por %p110_p2, %p109_p0  ;;  %p1313_p6 = por %p116_p4, %p115_p3 }
   0xb   : > { %p846_p7 = scmp.ge.s32.totalorder %s1237_s18, 1  ;;  %p176_p8 = scmp.lt.s32.totalorder %s1237_s18, 3 }
   0xd   : > { %p177_p9 = pnand %p846_p7, %p176_p8 }
   0xe   : > { %s848_s5 = sshll.u32 (!%p177_p9), %s1290_s19, 4  ;;  %s202_s9 = sand.u32 (!%p177_p9), 1, %s1229_s16  }
   0xf   : > { %180 = sbr.rel (%p177_p9) target bundleno = 660 (0x294), region = 32  ;;  %p208_p10 = scmp.lt.s32.totalorder (!%p177_p9), %s848_s5, 31 }
  0x10   : > { %p868_p11 = scmp.ne.s32.totalorder (!%p177_p9), %s1290_s19, 0 }
  0x14   : > { %v243_v0 = vld [vmem:[%s1569_s1 + $0x38] sm:$0xff]  ;;  %v242_v1 = vld [vmem:[%s1569_s1 + $0x30] sm:$0xff]  ;;  %v241_v2 = vld [vmem:[%s1569_s1 + $0x28] sm:$0xff]  ;;  %s1580_s5 = smov (!%p208_p10, %s848_s5), 31  ;;  %vm244_vm0 = vcmask 523264  }
  0x15   : > { %972 = vmatprep.subr.mxu0 %v243_v0  ;;  %v240_v3 = vld [vmem:[%s1569_s1 + $0x20] sm:$0xff]  ;;  %s849_s10 = sshll.u32 %s1580_s5, 3  ;;  %s851_s11 = sshll.u32 %s1580_s5, 2  ;;  %v239_v4 = vld [vmem:[%s1569_s1 + $0x18] sm:$0xff]  ;;  %v238_v6 = vld [vmem:[%s1569_s1 + $0x10] sm:$0xff] }
  0x16   : > { %973 = vmatpush3.msra.mxu0 %v243_v0  ;;  %s1338_s22 = scalar_lea.vmem %s1568_s0, %s849_s10  ;;  %s1343_s28 = scalar_lea.vmem %s1570_s2, %s851_s11  ;;  %v237_v7 = vld [vmem:[%s1569_s1 + $0x8] sm:$0xff]  ;;  %v236_v8 = vld [vmem:[%s1569_s1] sm:$0xff] }
  0x17   : > { %974 = vmatprep.subr.mxu0 %v242_v1  ;;  %v220_v5 = vld [vmem:[%s1338_s22] sm:$0xff]  ;;  %v221_v9 = vld [vmem:[%s1338_s22 + $0x8] sm:$0xff]  ;;  %v222_v10 = vld [vmem:[%s1338_s22 + $0x10] sm:$0xff]  ;;  %s847_s10 = sshll.u32 %s202_s9, 7 }
  0x18   : > { %975 = vmatpush3.msra.mxu0 %v242_v1  ;;  %988 = vmatprep.mubr.msk.f32.mxu0 %vm244_vm0, %v220_v5  ;;  %v223_v11 = vld [vmem:[%s1338_s22 + $0x18] sm:$0xff]  ;;  %v224_v12 = vld [vmem:[%s1338_s22 + $0x20] sm:$0xff]  ;;  %v225_v13 = vld [vmem:[%s1338_s22 + $0x28] sm:$0xff]  ;;  %s1391_s11 = scalar_lea.vmem [#allocation2], %s847_s10 }
  0x19   : > { %976 = vmatprep.subr.mxu0 %v241_v2  ;;  %v226_v14 = vld [vmem:[%s1338_s22 + $0x30] sm:$0xff]  ;;  %v227_v15 = vld [vmem:[%s1338_s22 + $0x38] sm:$0xff]  ;;  %v228_v16 = vld [vmem:[%s1338_s22 + $0x40] sm:$0xff] }
  0x1a   : > { %977 = vmatpush3.msra.mxu0 %v241_v2  ;;  %v229_v17 = vld [vmem:[%s1338_s22 + $0x48] sm:$0xff]  ;;  %v230_v18 = vld [vmem:[%s1338_s22 + $0x50] sm:$0xff]  ;;  %v231_v19 = vld [vmem:[%s1338_s22 + $0x58] sm:$0xff] }
  0x1b   : > { %978 = vmatprep.subr.mxu0 %v240_v3  ;;  %v232_v20 = vld [vmem:[%s1338_s22 + $0x60] sm:$0xff]  ;;  %v233_v21 = vld [vmem:[%s1338_s22 + $0x68] sm:$0xff]  ;;  %v234_v22 = vld [vmem:[%s1338_s22 + $0x70] sm:$0xff] }
  0x1c   : > { %979 = vmatpush3.msra.mxu0 %v240_v3  ;;  %v235_v23 = vld [vmem:[%s1338_s22 + $0x78] sm:$0xff] }
  0x1d   : > { %980 = vmatprep.subr.mxu0 %v239_v4 }
  0x1e   : > { %981 = vmatpush3.msra.mxu0 %v239_v4 }
  0x1f   : > { %982 = vmatprep.subr.mxu0 %v238_v6 }
  0x20   : > { %983 = vmatpush3.msra.mxu0 %v238_v6 }
  0x21   : > { %984 = vmatprep.subr.mxu0 %v237_v7 }
  0x22   : > { %985 = vmatpush3.msra.mxu0 %v237_v7 }
  0x23   : > { %986 = vmatprep.subr.mxu0 %v236_v8 }
  0x24   : > { %987 = vmatpush3.msra.mxu0 %v236_v8 }
  0x25   : > { %989 = vmatmul.mubr.msk.f32.vlgmr.msra.gmra.mxu0 %vm244_vm0, %v221_v9 }
  0x26   : > { %991 = vmatprep.mubr.msk.f32.mxu0 %vm244_vm0, %v222_v10 }
  0x29   : > { %992 = vmatmul.mubr.msk.f32.gmra.mxu0 %vm244_vm0, %v223_v11 }
  0x2a   : > { %994 = vmatprep.mubr.msk.f32.mxu0 %vm244_vm0, %v224_v12 }
  0x2d   : > { %995 = vmatmul.mubr.msk.f32.gmra.mxu0 %vm244_vm0, %v225_v13 }
  0x2e   : > { %997 = vmatprep.mubr.msk.f32.mxu0 %vm244_vm0, %v226_v14 }
  0x31   : > { %998 = vmatmul.mubr.msk.f32.gmra.mxu0 %vm244_vm0, %v227_v15 }
  0x32   : > { %1000 = vmatprep.mubr.msk.f32.mxu0 %vm244_vm0, %v228_v16 }
  0x35   : > { %1001 = vmatmul.mubr.msk.f32.gmra.mxu0 %vm244_vm0, %v229_v17 }
  0x36   : > { %1003 = vmatprep.mubr.msk.f32.mxu0 %vm244_vm0, %v230_v18 }
  0x39   : > { %1004 = vmatmul.mubr.msk.f32.gmra.mxu0 %vm244_vm0, %v231_v19 }
  0x3a   : > { %1006 = vmatprep.mubr.msk.f32.mxu0 %vm244_vm0, %v232_v20 }
  0x3d   : > { %1007 = vmatmul.mubr.msk.f32.gmra.mxu0 %vm244_vm0, %v233_v21 }
  0x3e   : > { %1009 = vmatprep.mubr.msk.f32.mxu0 %vm244_vm0, %v234_v22 }
  0x41   : > { %1010 = vmatmul.mubr.msk.f32.gmra.mxu0 %vm244_vm0, %v235_v23 }
  0xe5   : > { %v1389_v24 = vpop.f32.mrf.mxu0 }
  0xe6   : > { %439 = vst [vmem:[%s1391_s11 + $0x8] sm:$0xff] %v1389_v24 }
  0xe7   : > { %v1395_v25 = vpop.f32.mrf.mxu0 }
  0xe8   : > { %438 = vst [vmem:[%s1391_s11] sm:$0xff] %v1395_v25 }
  0xe9   : > { %v1399_v26 = vpop.f32.mrf.mxu0 }
  0xea   : > { %441 = vst [vmem:[%s1391_s11 + $0x18] sm:$0xff] %v1399_v26 }
  0xeb   : > { %v1403_v27 = vpop.f32.mrf.mxu0 }
  0xec   : > { %440 = vst [vmem:[%s1391_s11 + $0x10] sm:$0xff] %v1403_v27 }
  0xed   : > { %v1407_v28 = vpop.f32.mrf.mxu0 }
  0xee   : > { %443 = vst [vmem:[%s1391_s11 + $0x28] sm:$0xff] %v1407_v28 }
  0xef   : > { %v1411_v29 = vpop.f32.mrf.mxu0 }
  0xf0   : > { %442 = vst [vmem:[%s1391_s11 + $0x20] sm:$0xff] %v1411_v29 }
  0xf1   : > { %v1415_v30 = vpop.f32.mrf.mxu0 }
  0xf2   : > { %445 = vst [vmem:[%s1391_s11 + $0x38] sm:$0xff] %v1415_v30 }
  0xf3   : > { %v1419_v31 = vpop.f32.mrf.mxu0 }
  0xf4   : > { %444 = vst [vmem:[%s1391_s11 + $0x30] sm:$0xff] %v1419_v31 }
  0xf5   : > { %v1423_v32 = vpop.f32.mrf.mxu0 }
  0xf6   : > { %447 = vst [vmem:[%s1391_s11 + $0x48] sm:$0xff] %v1423_v32 }
  0xf7   : > { %v1427_v33 = vpop.f32.mrf.mxu0 }
  0xf8   : > { %446 = vst [vmem:[%s1391_s11 + $0x40] sm:$0xff] %v1427_v33 }
  0xf9   : > { %v1431_v34 = vpop.f32.mrf.mxu0 }
  0xfa   : > { %449 = vst [vmem:[%s1391_s11 + $0x58] sm:$0xff] %v1431_v34 }
  0xfb   : > { %v1435_v35 = vpop.f32.mrf.mxu0 }
  0xfc   : > { %448 = vst [vmem:[%s1391_s11 + $0x50] sm:$0xff] %v1435_v35 }
  0xfd   : > { %v1008_v36 = vpop.f32.mrf.mxu0 }
  0xfe   : > { %451 = vst [vmem:[%s1391_s11 + $0x68] sm:$0xff] %v1008_v36 }
  0xff   : > { %v419_v37 = vpop.f32.mrf.mxu0 }
 0x100   : > { %450 = vst [vmem:[%s1391_s11 + $0x60] sm:$0xff] %v419_v37  ;;  %457 = sbr.rel (%p868_p11) target bundleno = 270 (0x10e), region = 36 }
 0x101   : > { %v1011_v38 = vpop.f32.mrf.mxu0 }
 0x102   : > { %453 = vst [vmem:[%s1391_s11 + $0x78] sm:$0xff] %v1011_v38 }
 0x103   : > { %v429_v39 = vpop.f32.mrf.mxu0 }
 0x104   : > { %452 = vst [vmem:[%s1391_s11 + $0x70] sm:$0xff] %v429_v39 }
 0x105   : > { %v1239_v40 = vmov 0.0  }
 0x106   : > { %458 = vst [vmem:[#allocation4] sm:$0xff] %v1239_v40  ;;  %459 = vst [vmem:[#allocation4 + $0x8] sm:$0xff] %v1239_v40 }
 0x107   : > { %460 = vst [vmem:[#allocation4 + $0x10] sm:$0xff] %v1239_v40  ;;  %461 = vst [vmem:[#allocation4 + $0x18] sm:$0xff] %v1239_v40 }
 0x108   : > { %462 = vst [vmem:[#allocation4 + $0x20] sm:$0xff] %v1239_v40  ;;  %463 = vst [vmem:[#allocation4 + $0x28] sm:$0xff] %v1239_v40 }
 0x109   : > { %464 = vst [vmem:[#allocation4 + $0x30] sm:$0xff] %v1239_v40  ;;  %465 = vst [vmem:[#allocation4 + $0x38] sm:$0xff] %v1239_v40 }
 0x10a   : > { %466 = vst [vmem:[#allocation4 + $0x40] sm:$0xff] %v1239_v40  ;;  %467 = vst [vmem:[#allocation4 + $0x48] sm:$0xff] %v1239_v40 }
 0x10b   : > { %468 = vst [vmem:[#allocation4 + $0x50] sm:$0xff] %v1239_v40  ;;  %469 = vst [vmem:[#allocation4 + $0x58] sm:$0xff] %v1239_v40 }
 0x10c   : > { %470 = vst [vmem:[#allocation4 + $0x60] sm:$0xff] %v1239_v40  ;;  %471 = vst [vmem:[#allocation4 + $0x68] sm:$0xff] %v1239_v40 }
 0x10d   : > { %472 = vst [vmem:[#allocation4 + $0x70] sm:$0xff] %v1239_v40  ;;  %473 = vst [vmem:[#allocation4 + $0x78] sm:$0xff] %v1239_v40 }
 0x10e PF: > { %v878_v41 = vld [vmem:[%s1343_s28] sm:$0xff]   ;;  %1012 = vmatprep.subr.mxu0 %v1011_v38  ;;  %1068 = vmatprep.subr.mxu1 %v1011_v38  ;;  %v909_v44 = vld [vmem:[%s1343_s28 + $0x8] sm:$0xff]   ;;  %v910_v47 = vld [vmem:[%s1343_s28 + $0x10] sm:$0xff]   ;;  %s876_s12 = sshll.u32 %s1290_s19, 11  ;;  %s745_s13 = sshll.u32 %s1391_s11, 4  ;;  %s1507_s13 = int_to_ptr.vmem [resolvable:$true] %s745_s13 }
 0x10f   : > { %v879_v42 = vunpack.c.l.bf16 %v878_v41  ;;  %1013 = vmatpush3.msra.mxu0 %v1011_v38  ;;  %1084 = vmatpush3.msra.mxu1 %v1011_v38  ;;  %v880_v43 = vunpack.c.h.bf16 %v878_v41  ;;  %v883_v45 = vunpack.c.l.bf16 %v909_v44  ;;  %v884_v46 = vunpack.c.h.bf16 %v909_v44  ;;  %v911_v50 = vld [vmem:[%s1343_s28 + $0x18] sm:$0xff]   ;;  %v912_v53 = vld [vmem:[%s1343_s28 + $0x20] sm:$0xff]   ;;  %v913_v56 = vld [vmem:[%s1343_s28 + $0x28] sm:$0xff]   ;;  %s1505_s22 = scalar_lea.hbm %s1571_s3, %s876_s12  ;;  %s1511_s23 = scalar_lea.sflag [#allocation3], %s202_s9 }
 0x110   : > { %1014 = vmatprep.subr.mxu0 %v429_v39  ;;  %1069 = vmatprep.subr.mxu1 %v429_v39  ;;  %v887_v48 = vunpack.c.l.bf16 %v910_v47  ;;  %v888_v49 = vunpack.c.h.bf16 %v910_v47  ;;  %v891_v51 = vunpack.c.l.bf16 %v911_v50  ;;  %v892_v52 = vunpack.c.h.bf16 %v911_v50  ;;  %v914_v59 = vld [vmem:[%s1343_s28 + $0x30] sm:$0xff]   ;;  %v915_v62 = vld [vmem:[%s1343_s28 + $0x38] sm:$0xff]   ;;  %s1149_s27 = scalar_lea.vmem %s1507_s13, 2048  ;;  %s1240_s28 = smov [#allocation2]  }
 0x111   : > { %522 = vxpose.xlu0.b32.start [1/16] %v879_v42, 128  ;;  %1015 = vmatpush3.msra.mxu0 %v429_v39  ;;  %v895_v54 = vunpack.c.l.bf16 %v912_v53  ;;  %v896_v55 = vunpack.c.h.bf16 %v912_v53  ;;  %v899_v57 = vunpack.c.l.bf16 %v913_v56  ;;  %v900_v58 = vunpack.c.h.bf16 %v913_v56  ;;  %p1150_p12 = scmp.ne.s32.totalorder %s1507_s13, %s1149_s27  ;;  %s1153_s29 = sshll.u32 %s1240_s28, 4  ;;  %s1154_s29 = int_to_ptr.vmem [resolvable:$false] %s1153_s29 }
 0x112   : > { %1016 = vmatprep.subr.mxu0 %v1008_v36  ;;  %1085 = vmatpush3.msra.mxu1 %v429_v39  ;;  %v903_v60 = vunpack.c.l.bf16 %v914_v59  ;;  %v904_v61 = vunpack.c.h.bf16 %v914_v59  ;;  %v907_v63 = vunpack.c.l.bf16 %v915_v62  ;;  %v908_v0 = vunpack.c.h.bf16 %v915_v62  ;;  %s1155_s30 = scalar_lea.vmem %s1154_s29, 4096  ;;  %p1156_p1 = scmp.lt.s32.totalorder %s1507_s13, %s1154_s29 }
 0x113   : > { %1017 = vmatpush3.msra.mxu0 %v1008_v36  ;;  %1070 = vmatprep.subr.mxu1 %v1008_v36  ;;  %p1151_p13 = pnand %p1150_p12, %p1309_p5  ;;  %p1157_p3 = scmp.lt.s32.totalorder %s1155_s30, %s1149_s27 }
 0x114   : > { %1018 = vmatprep.subr.mxu0 %v419_v37  ;;  %1086 = vmatpush3.msra.mxu1 %v1008_v36 }
 0x115   : > { %523 = vxpose.xlu0.b32.cont [2/16] %v880_v43, 128  ;;  %1019 = vmatpush3.msra.mxu0 %v419_v37  ;;  %p1152_p0 = pneg %p1151_p13  ;;  %p1158_p4 = por %p1157_p3, %p1156_p1 }
 0x116   : > { %1020 = vmatprep.subr.mxu0 %v1431_v34  ;;  %1071 = vmatprep.subr.mxu1 %v419_v37 }
 0x117   : > { %1021 = vmatpush3.msra.mxu0 %v1431_v34  ;;  %1087 = vmatpush3.msra.mxu1 %v419_v37  ;;  %p1159_p7 = pnand %p1158_p4, %p1152_p0 }
 0x118   : > { %1022 = vmatprep.subr.mxu0 %v1435_v35  ;;  %1072 = vmatprep.subr.mxu1 %v1431_v34 }
 0x119   : > { %524 = vxpose.xlu0.b32.cont [3/16] %v883_v45, 128  ;;  %1023 = vmatpush3.msra.mxu0 %v1435_v35 }
 0x11a   : > { %1024 = vmatprep.subr.mxu0 %v1423_v32  ;;  %1088 = vmatpush3.msra.mxu1 %v1431_v34 }
 0x11b   : > { %1025 = vmatpush3.msra.mxu0 %v1423_v32  ;;  %1073 = vmatprep.subr.mxu1 %v1435_v35 }
 0x11c   : > { %1026 = vmatprep.subr.mxu0 %v1427_v33  ;;  %1089 = vmatpush3.msra.mxu1 %v1435_v35 }
 0x11d   : > { %525 = vxpose.xlu0.b32.cont [4/16] %v884_v46, 128  ;;  %1027 = vmatpush3.msra.mxu0 %v1427_v33 }
 0x11e   : > { %1028 = vmatprep.subr.mxu0 %v1415_v30  ;;  %1074 = vmatprep.subr.mxu1 %v1423_v32 }
 0x11f   : > { %1029 = vmatpush3.msra.mxu0 %v1415_v30  ;;  %1090 = vmatpush3.msra.mxu1 %v1423_v32 }
 0x120   : > { %1030 = vmatprep.subr.mxu0 %v1419_v31  ;;  %1075 = vmatprep.subr.mxu1 %v1427_v33 }
 0x121   : > { %526 = vxpose.xlu0.b32.cont [5/16] %v887_v48, 128  ;;  %1031 = vmatpush3.msra.mxu0 %v1419_v31 }
 0x122   : > { %1032 = vmatprep.subr.mxu0 %v1407_v28  ;;  %1091 = vmatpush3.msra.mxu1 %v1427_v33 }
 0x123   : > { %1033 = vmatpush3.msra.mxu0 %v1407_v28  ;;  %1076 = vmatprep.subr.mxu1 %v1415_v30 }
 0x124   : > { %1034 = vmatprep.subr.mxu0 %v1411_v29  ;;  %1092 = vmatpush3.msra.mxu1 %v1415_v30 }
 0x125   : > { %527 = vxpose.xlu0.b32.cont [6/16] %v888_v49, 128  ;;  %1035 = vmatpush3.msra.mxu0 %v1411_v29 }
 0x126   : > { %1036 = vmatprep.subr.mxu0 %v1399_v26  ;;  %1077 = vmatprep.subr.mxu1 %v1419_v31 }
 0x127   : > { %1037 = vmatpush3.msra.mxu0 %v1399_v26  ;;  %1093 = vmatpush3.msra.mxu1 %v1419_v31 }
 0x128   : > { %1038 = vmatprep.subr.mxu0 %v1403_v27  ;;  %1078 = vmatprep.subr.mxu1 %v1407_v28 }
 0x129   : > { %528 = vxpose.xlu0.b32.cont [7/16] %v891_v51, 128  ;;  %1039 = vmatpush3.msra.mxu0 %v1403_v27 }
 0x12a   : > { %1040 = vmatprep.subr.mxu0 %v1389_v24  ;;  %1094 = vmatpush3.msra.mxu1 %v1407_v28 }
 0x12b   : > { %1041 = vmatpush3.msra.mxu0 %v1389_v24  ;;  %1079 = vmatprep.subr.mxu1 %v1411_v29 }
 0x12c   : > { %1042 = vmatprep.subr.mxu0 %v1395_v25  ;;  %1095 = vmatpush3.msra.mxu1 %v1411_v29 }
 0x12d   : > { %529 = vxpose.xlu0.b32.cont [8/16] %v892_v52, 128  ;;  %1043 = vmatpush3.msra.mxu0 %v1395_v25 }
 0x12e   : > { %1080 = vmatprep.subr.mxu1 %v1399_v26 }
 0x12f   : > { %1096 = vmatpush3.msra.mxu1 %v1399_v26 }
 0x130   : > { %1081 = vmatprep.subr.mxu1 %v1403_v27 }
 0x131   : > { %530 = vxpose.xlu0.b32.cont [9/16] %v895_v54, 128  ;;  %1097 = vmatpush3.msra.mxu1 %v1403_v27 }
 0x132   : > { %1082 = vmatprep.subr.mxu1 %v1389_v24 }
 0x133   : > { %1098 = vmatpush3.msra.mxu1 %v1389_v24 }
 0x134   : > { %1083 = vmatprep.subr.mxu1 %v1395_v25 }
 0x135   : > { %531 = vxpose.xlu0.b32.cont [10/16] %v896_v55, 128  ;;  %1099 = vmatpush3.msra.mxu1 %v1395_v25 }
 0x139   : > { %532 = vxpose.xlu0.b32.cont [11/16] %v899_v57, 128 }
 0x13d   : > { %533 = vxpose.xlu0.b32.cont [12/16] %v900_v58, 128 }
 0x141   : > { %534 = vxpose.xlu0.b32.cont [13/16] %v903_v60, 128 }
 0x145   : > { %535 = vxpose.xlu0.b32.cont [14/16] %v904_v61, 128 }
 0x149   : > { %536 = vxpose.xlu0.b32.cont [15/16] %v907_v63, 128 }
 0x14d   : > { %537 = vxpose.xlu0.b32.end [16/16] %v908_v0, 128 }
 0x18d   : > { %v538_v1 = vpop.trf.xlu0 }
 0x18e   : > { %1044 = vmatprep.mubr.f32.mxu0 %v538_v1 }
 0x191   : > { %v539_v2 = vpop.trf.xlu0 }
 0x192   : > { %1045 = vmatmul.mubr.f32.vlgmr.msra.gmra.mxu0 %v539_v2 }
 0x195   : > { %v540_v3 = vpop.trf.xlu0 }
 0x196   : > { %1047 = vmatprep.mubr.f32.mxu0 %v540_v3 }
 0x199   : > { %v541_v4 = vpop.trf.xlu0 }
 0x19a   : > { %1048 = vmatmul.mubr.f32.gmra.mxu0 %v541_v4 }
 0x19d   : > { %v542_v5 = vpop.trf.xlu0 }
 0x19e   : > { %1050 = vmatprep.mubr.f32.mxu1 %v542_v5 }
 0x1a1   : > { %v543_v6 = vpop.trf.xlu0 }
 0x1a2   : > { %1051 = vmatmul.mubr.f32.vlgmr.msra.gmra.mxu1 %v543_v6 }
 0x1a5   : > { %v544_v7 = vpop.trf.xlu0 }
 0x1a6   : > { %1053 = vmatprep.mubr.f32.mxu1 %v544_v7 }
 0x1a9   : > { %v545_v8 = vpop.trf.xlu0 }
 0x1aa   : > { %1054 = vmatmul.mubr.f32.gmra.mxu1 %v545_v8 }
 0x1ad   : > { %v546_v9 = vpop.trf.xlu0 }
 0x1ae   : > { %1056 = vmatprep.mubr.f32.mxu1 %v546_v9 }
 0x1b1   : > { %v547_v10 = vpop.trf.xlu0 }
 0x1b2   : > { %1057 = vmatmul.mubr.f32.gmra.mxu1 %v547_v10 }
 0x1b5   : > { %v548_v11 = vpop.trf.xlu0 }
 0x1b6   : > { %1059 = vmatprep.mubr.f32.mxu1 %v548_v11 }
 0x1b9   : > { %v549_v12 = vpop.trf.xlu0 }
 0x1ba   : > { %1060 = vmatmul.mubr.f32.gmra.mxu1 %v549_v12 }
 0x1bd   : > { %v550_v13 = vpop.trf.xlu0 }
 0x1be   : > { %1062 = vmatprep.mubr.f32.mxu1 %v550_v13 }
 0x1c1   : > { %v551_v14 = vpop.trf.xlu0 }
 0x1c2   : > { %1063 = vmatmul.mubr.f32.gmra.mxu1 %v551_v14 }
 0x1c5   : > { %v552_v15 = vpop.trf.xlu0 }
 0x1c6   : > { %1065 = vmatprep.mubr.f32.mxu1 %v552_v15 }
 0x1c9   : > { %v553_v16 = vpop.trf.xlu0 }
 0x1ca   : > { %1066 = vmatmul.mubr.f32.gmra.mxu1 %v553_v16 }
 0x1cb   : > { %1162 = shalt.err (!%p1159_p7)
}
 0x1cc   : > { %s1163_s5 = scalar_lea.hbm %s1505_s22, 2048  ;;  %s1167_s8 = scalar_lea.hbm %s1571_s3, 4096 }
 0x1cd   : > { %p1164_p8 = scmp.ne.s32.totalorder %s1505_s22, %s1163_s5  ;;  %p1168_p11 = scmp.lt.s32.totalorder %s1505_s22, %s1571_s3 }
 0x1ce   : > { %p1169_p12 = scmp.lt.s32.totalorder %s1167_s8, %s1163_s5 }
 0x1cf   : > { %p1165_p9 = pnand %p1164_p8, %p1309_p5 }
 0x1d0   : > { %p1170_p13 = por %p1169_p12, %p1168_p11 }
 0x1d1   : > { %p1166_p10 = pneg %p1165_p9 }
 0x1d3   : > { %p1171_p0 = pnand %p1170_p13, %p1166_p10 }
 0x1d5   : > { %1174 = shalt.err (!%p1171_p0)
}
 0x1d6   : > { %s1241_s11 = smov 128   ;;  %s1242_s12 = smov 8   ;;  %v507_v17 = vld [vmem:[#allocation4 + $0x8] sm:$0xff]  ;;  %v506_v19 = vld [vmem:[#allocation4] sm:$0xff]  ;;  %v509_v23 = vld [vmem:[#allocation4 + $0x18] sm:$0xff] }
 0x1d7   : > { %1100 = dma.vmem_to_hbm [thread:$0]  (%p1309_p5), %s1507_s13, 2048, %s1505_s22, %s1511_s23, %s1241_s11, %s1241_s11, %s1242_s12   ;;  %v508_v25 = vld [vmem:[#allocation4 + $0x10] sm:$0xff]  ;;  %v511_v29 = vld [vmem:[#allocation4 + $0x28] sm:$0xff]  ;;  %v510_v31 = vld [vmem:[#allocation4 + $0x20] sm:$0xff] }
 0x1d8   : > { %v513_v35 = vld [vmem:[#allocation4 + $0x38] sm:$0xff]  ;;  %v512_v37 = vld [vmem:[#allocation4 + $0x30] sm:$0xff]  ;;  %v515_v41 = vld [vmem:[#allocation4 + $0x48] sm:$0xff]  ;;  %s1243_s25 = smov [#allocation4]  }
 0x1d9   : > { %v514_v43 = vld [vmem:[#allocation4 + $0x40] sm:$0xff]  ;;  %v517_v47 = vld [vmem:[#allocation4 + $0x58] sm:$0xff]  ;;  %v516_v49 = vld [vmem:[#allocation4 + $0x50] sm:$0xff]  ;;  %s758_s13 = sshll.u32 %s1243_s25, 4  ;;  %s759_s13 = int_to_ptr.vmem [resolvable:$true] %s758_s13 }
 0x1da   : > { %v519_v53 = vld [vmem:[#allocation4 + $0x68] sm:$0xff]  ;;  %v518_v55 = vld [vmem:[#allocation4 + $0x60] sm:$0xff]  ;;  %v521_v59 = vld [vmem:[#allocation4 + $0x78] sm:$0xff]  ;;  %s1175_s14 = scalar_lea.vmem %s759_s13, 2048  ;;  %p1182_p4 = scmp.lt.s32.totalorder %s759_s13, %s759_s13 }
 0x1db   : > { %v520_v61 = vld [vmem:[#allocation4 + $0x70] sm:$0xff]  ;;  %p1176_p5 = scmp.ne.s32.totalorder %s759_s13, %s1175_s14  ;;  %p1183_p7 = scmp.lt.s32.totalorder %s1175_s14, %s1175_s14 }
 0x1dd   : > { %p1177_p1 = pnand %p1176_p5, %p110_p2  ;;  %p1184_p8 = por %p1183_p7, %p1182_p4 }
 0x1df   : > { %p1178_p3 = pneg %p1177_p1 }
 0x1e1   : > { %p1185_p9 = pnand %p1184_p8, %p1178_p3 }
 0x252   : > { %v1046_v18 = vpop.f32.mrf.mxu0 }
 0x253   : > { %v700_v20 = vadd.f32 %v1046_v18, %v507_v17 }
 0x254   : > { %v620_v21 = vpop.f32.mrf.mxu0 }
 0x255   : > { %716 = vst [vmem:[#allocation4 + $0x8] sm:$0xff] %v700_v20  ;;  %v699_v22 = vadd.f32 %v620_v21, %v506_v19 }
 0x257   : > { %715 = vst [vmem:[#allocation4] sm:$0xff] %v699_v22 }
 0x25a   : > { %v1049_v24 = vpop.f32.mrf.mxu0 }
 0x25b   : > { %v702_v26 = vadd.f32 %v1049_v24, %v509_v23 }
 0x25c   : > { %v630_v27 = vpop.f32.mrf.mxu0 }
 0x25d   : > { %718 = vst [vmem:[#allocation4 + $0x18] sm:$0xff] %v702_v26  ;;  %v701_v28 = vadd.f32 %v630_v27, %v508_v25 }
 0x25f   : > { %717 = vst [vmem:[#allocation4 + $0x10] sm:$0xff] %v701_v28 }
 0x262   : > { %v1052_v30 = vpop.f32.mrf.mxu1 }
 0x263   : > { %v704_v32 = vadd.f32 %v1052_v30, %v511_v29 }
 0x264   : > { %v640_v33 = vpop.f32.mrf.mxu1 }
 0x265   : > { %720 = vst [vmem:[#allocation4 + $0x28] sm:$0xff] %v704_v32  ;;  %v703_v34 = vadd.f32 %v640_v33, %v510_v31 }
 0x267   : > { %719 = vst [vmem:[#allocation4 + $0x20] sm:$0xff] %v703_v34 }
 0x26a   : > { %v1055_v36 = vpop.f32.mrf.mxu1 }
 0x26b   : > { %v706_v38 = vadd.f32 %v1055_v36, %v513_v35 }
 0x26c   : > { %v650_v39 = vpop.f32.mrf.mxu1 }
 0x26d   : > { %722 = vst [vmem:[#allocation4 + $0x38] sm:$0xff] %v706_v38  ;;  %v705_v40 = vadd.f32 %v650_v39, %v512_v37 }
 0x26f   : > { %721 = vst [vmem:[#allocation4 + $0x30] sm:$0xff] %v705_v40 }
 0x272   : > { %v1058_v42 = vpop.f32.mrf.mxu1 }
 0x273   : > { %v708_v44 = vadd.f32 %v1058_v42, %v515_v41 }
 0x274   : > { %v660_v45 = vpop.f32.mrf.mxu1 }
 0x275   : > { %724 = vst [vmem:[#allocation4 + $0x48] sm:$0xff] %v708_v44  ;;  %v707_v46 = vadd.f32 %v660_v45, %v514_v43 }
 0x277   : > { %723 = vst [vmem:[#allocation4 + $0x40] sm:$0xff] %v707_v46 }
 0x27a   : > { %v1061_v48 = vpop.f32.mrf.mxu1 }
 0x27b   : > { %v710_v50 = vadd.f32 %v1061_v48, %v517_v47 }
 0x27c   : > { %v670_v51 = vpop.f32.mrf.mxu1 }
 0x27d   : > { %726 = vst [vmem:[#allocation4 + $0x58] sm:$0xff] %v710_v50  ;;  %v709_v52 = vadd.f32 %v670_v51, %v516_v49 }
 0x27f   : > { %725 = vst [vmem:[#allocation4 + $0x50] sm:$0xff] %v709_v52 }
 0x282   : > { %v1064_v54 = vpop.f32.mrf.mxu1 }
 0x283   : > { %v712_v56 = vadd.f32 %v1064_v54, %v519_v53 }
 0x284   : > { %v680_v57 = vpop.f32.mrf.mxu1 }
 0x285   : > { %728 = vst [vmem:[#allocation4 + $0x68] sm:$0xff] %v712_v56  ;;  %v711_v58 = vadd.f32 %v680_v57, %v518_v55 }
 0x287   : > { %727 = vst [vmem:[#allocation4 + $0x60] sm:$0xff] %v711_v58 }
 0x28a   : > { %v1067_v60 = vpop.f32.mrf.mxu1 }
 0x28b   : > { %v714_v62 = vadd.f32 %v1067_v60, %v521_v59 }
 0x28c   : > { %v690_v63 = vpop.f32.mrf.mxu1 }
 0x28d   : > { %730 = vst [vmem:[#allocation4 + $0x78] sm:$0xff] %v714_v62  ;;  %v713_v0 = vadd.f32 %v690_v63, %v520_v61 }
 0x28f   : > { %729 = vst [vmem:[#allocation4 + $0x70] sm:$0xff] %v713_v0 }
 0x290   : > { %1188 = shalt.err (!%p1185_p9)
}
 0x291   : > { %1102 = dma.vmem_to_hbm [thread:$0]  (%p110_p2), %s759_s13, 2048, %s1572_s4, [#allocation5], %s1241_s11, %s1241_s11, %s1242_s12  }
 0x292   : > { %1216 = dma.done.wait (%p110_p2), [#allocation5], 2048  }
 0x293   : > { %1218 = vsyncadd (%p110_p2), [#allocation5], 4294965248 }
 0x294 PF: > { %p1112_p10 = scmp.ge.s32.totalorder %s1237_s18, 2  ;;  %s777_s23 = sand.u32 1, %s1225_s15  }
 0x295   : > { %s778_s27 = scalar_lea.sflag [#allocation3], %s777_s23 }
 0x296   : > { %p1107_p11 = pnand %p1112_p10, %p1313_p6 }
 0x298   : > { %p1108_p12 = pneg %p1107_p11 }
 0x29a   : > { %1220 = dma.done.wait (%p1108_p12), %s778_s27, 2048  }
 0x29b   : > { %1222 = vsyncadd (%p1108_p12), %s778_s27, 4294965248  ;;  %p16_p13 = scmp.ge.s32.totalorder %s1294_s21, 4   ;;  %s1575_s15 = smov %s1229_s16 }
 0x29c   : > { %s1576_s16 = smov %s1233_s17  ;;  %s1577_s17 = smov %s1305_s24 }
 0x29d   : > { %s1578_s18 = smov %s1294_s21  ;;  %18 = sbr.rel (!%p16_p13) target bundleno = 4 (0x4), region = 82 }
 0x2a2   :  { %783 = vsyncpa [#allocation3], 1 }
 0x2a3   :  { %785 = vsyncpa [#allocation3 + $0x1], 1 }
 0x2a4   :  { %786 = vsyncpa [#allocation5], 1 }

</bundles_post_ra>
